<compile_context>
chip_gen: v7x
topology: tpu7x:2x2x1
jax: 0.10.0
libtpu: 0.0.40
codegen_flags: <defaults>
</compile_context>

<pallas_src>
import functools

import jax
import jax.numpy as jnp
from jax.experimental import pallas as pl
from jax.experimental.pallas import tpu as pltpu

LANE = 128
MAX_ROW_TILE = 1024  # (1024, 128) f32 block = 512 KiB; ~86% of HBM roofline on v6e


def _cdiv(a, b):
    return (a + b - 1) // b


def _round_up(a, b):
    return _cdiv(a, b) * b


def _int_pow(base, k):
    """base ** k for a static non-negative integer k, as unrolled VPU multiplies."""
    if k == 0:
        return jnp.ones_like(base)
    result = None
    while True:
        if k & 1:
            result = base if result is None else result * base
        k >>= 1
        if k == 0:
            return result
        base = base * base


def _asl_kernel(x_ref, y_ref, out_ref, *, gamma_neg, gamma_pos, clip, eps,
                binary_labels):
    """Per-tile asymmetric loss, accumulated into a resident output block."""
    j = pl.program_id(1)

    @pl.when(j == 0)
    def _():
        out_ref[...] = jnp.zeros_like(out_ref)

    x = x_ref[...].astype(jnp.float32)
    y_raw = y_ref[...].astype(jnp.float32)

    keep = y_raw > -0.5
    # Sanitize masked-out / padded entries so no NaN/Inf can leak through the
    # final select (matches PyTorch, which drops them before computing).
    x = jnp.where(keep, x, 0.0)
    y = jnp.where(keep, y_raw, 0.0)

    xs_pos = jax.nn.sigmoid(x)
    xs_neg = 1.0 - xs_pos
    if clip is not None and clip > 0:
        xs_neg = jnp.minimum(xs_neg + clip, 1.0)

    use_focal = (gamma_neg > 0) or (gamma_pos > 0)
    int_gammas = (
        float(gamma_neg).is_integer() and float(gamma_pos).is_integer()
        and 0 <= gamma_neg <= 32 and 0 <= gamma_pos <= 32)

    if binary_labels:
        # y in {0, 1} after masking: y*log(a) + (1-y)*log(b) == log(select).
        is_pos = y > 0.5
        p_t = jnp.where(is_pos, xs_pos, xs_neg)          # == pt of the reference
        loss = jnp.log(jnp.maximum(p_t, eps))            # single EUP log
        if use_focal:
            base = 1.0 - p_t
            if int_gammas:
                w = jnp.where(is_pos,
                              _int_pow(base, int(gamma_pos)),
                              _int_pow(base, int(gamma_neg)))
            else:
                g = jnp.where(is_pos, jnp.float32(gamma_pos),
                              jnp.float32(gamma_neg))
                w = jnp.power(base, g)
            loss = loss * w
    else:
        # General (possibly soft-label) path — exact formula of the module.
        los_pos = y * jnp.log(jnp.maximum(xs_pos, eps))
        los_neg = (1.0 - y) * jnp.log(jnp.maximum(xs_neg, eps))
        loss = los_pos + los_neg
        if use_focal:
            pt = xs_pos * y + xs_neg * (1.0 - y)
            g = gamma_pos * y + gamma_neg * (1.0 - y)
            loss = loss * jnp.power(1.0 - pt, g)

    out_ref[...] += jnp.where(keep, loss, 0.0)


def custom_asymmetric_loss(x, y, *, gamma_neg=4, gamma_pos=1, clip=0.05,
                           eps=1e-8, binary_labels=True,
                           max_row_tile=MAX_ROW_TILE):
    """Pallas TPU implementation of CustomAsymmetricLoss.forward.

    binary_labels=True assumes labels are in {-1 (ignore), 0, 1} (the usual ASL
    setting) and enables the fused-log / integer-power fast path; set it to
    False for soft labels to use the exact general formula.
    """
    x_flat = jnp.reshape(x, (-1,))
    y_flat = jnp.reshape(y, (-1,))
    n = x_flat.shape[0]
    if n == 0:
        return jnp.float32(0.0)

    if jnp.issubdtype(y_flat.dtype, jnp.unsignedinteger):
        y_flat = y_flat.astype(jnp.int32)  # so the -1 pad value is representable

    # Sub-32-bit inputs pack along sublanes -> keep row granularity at 32.
    gran = 8
    if (jnp.dtype(x_flat.dtype).itemsize < 4
            or jnp.dtype(y_flat.dtype).itemsize < 4):
        gran = 32

    rows_raw = _cdiv(n, LANE)
    splits = 2 if rows_raw >= 2 * gran else 1      # 2 partials -> both TCs on v7x
    per_split = _cdiv(rows_raw, splits)
    row_tile = min(max_row_tile, _round_up(per_split, gran))
    row_tile = _round_up(row_tile, gran)
    tiles_per_split = _cdiv(per_split, row_tile)
    rows = splits * tiles_per_split * row_tile
    n_cover = rows * LANE

    if n_cover != n:
        # TODO(synk): this pad materializes a copy of x/y; an in-kernel ragged
        # tail mask (iota vs n) would avoid it for non-aligned sizes.
        x_flat = jnp.pad(x_flat, (0, n_cover - n))
        # Pad labels with the ignore value so padding is masked out in-kernel.
        y_flat = jnp.pad(y_flat, (0, n_cover - n), constant_values=-1)

    x2d = x_flat.reshape(rows, LANE)
    y2d = y_flat.reshape(rows, LANE)

    kernel = functools.partial(
        _asl_kernel, gamma_neg=gamma_neg, gamma_pos=gamma_pos, clip=clip,
        eps=eps, binary_labels=binary_labels)

    in_idx = lambda c, j: (c * tiles_per_split + j, 0)

    partial = pl.pallas_call(
        kernel,
        out_shape=jax.ShapeDtypeStruct((splits * row_tile, LANE), jnp.float32),
        grid_spec=pltpu.PrefetchScalarGridSpec(
            num_scalar_prefetch=0,
            grid=(splits, tiles_per_split),
            in_specs=[
                pl.BlockSpec((row_tile, LANE), in_idx),
                pl.BlockSpec((row_tile, LANE), in_idx),
            ],
            out_specs=pl.BlockSpec((row_tile, LANE), lambda c, j: (c, 0)),
        ),
        compiler_params=pltpu.CompilerParams(
            dimension_semantics=("parallel", "arbitrary")),
    )(x2d, y2d)

    # Tiny, lane-dense final reduction (+ the module's leading minus sign).
    return -jnp.sum(partial)


def _reference_jax(x, y, *, gamma_neg=4, gamma_pos=1, clip=0.05, eps=1e-8):
    """Plain-JAX reference mirroring the PyTorch forward (mask-as-select)."""
    x = jnp.reshape(x, (-1,)).astype(jnp.float32)
    y_raw = jnp.reshape(y, (-1,)).astype(jnp.float32)
    mask = y_raw > -0.5
    y = jnp.where(mask, y_raw, 0.0)
    x = jnp.where(mask, x, 0.0)
    xs = jax.nn.sigmoid(x)
    xs_pos = xs
    xs_neg = 1.0 - xs
    if clip is not None and clip > 0:
        xs_neg = jnp.minimum(xs_neg + clip, 1.0)
    los_pos = y * jnp.log(jnp.maximum(xs_pos, eps))
    los_neg = (1.0 - y) * jnp.log(jnp.maximum(xs_neg, eps))
    loss = los_pos + los_neg
    if gamma_neg > 0 or gamma_pos > 0:
        pt = xs_pos * y + xs_neg * (1.0 - y)
        g = gamma_pos * y + gamma_neg * (1.0 - y)
        loss = loss * jnp.power(1.0 - pt, g)
    loss = jnp.where(mask, loss, 0.0)
    return -jnp.sum(loss)


def _make_inputs(key, shape):
    kx, ky, km = jax.random.split(key, 3)
    x = jax.random.normal(kx, shape, dtype=jnp.float32)
    y_bin = (jax.random.uniform(ky, shape) > 0.5).astype(jnp.float32)
    ignore = jax.random.uniform(km, shape) < 0.1
    y = jnp.where(ignore, -1.0, y_bin)
    return x, y


if __name__ == "__main__":
    key = jax.random.PRNGKey(0)
    k1, k2, k3 = jax.random.split(key, 3)

    # 1) Primary case: logits (batch=2, channels=4, H=16, W=16); labels in
    #    {-1, 0, 1} (-1 = ignore, matching the `y > -0.5` mask).
    x, y = _make_inputs(k1, (2, 4, 16, 16))
    out = jax.block_until_ready(custom_asymmetric_loss(x, y))
    ref = _reference_jax(x, y)
    assert jnp.allclose(out, ref, rtol=1e-4, atol=1e-3), (out, ref)

    # 2) Ragged size (exercises the pad/masked-ignore path).
    x2, y2 = _make_inputs(k2, (2, 3, 15, 17))
    out2 = jax.block_until_ready(custom_asymmetric_loss(x2, y2))
    ref2 = _reference_jax(x2, y2)
    assert jnp.allclose(out2, ref2, rtol=1e-4, atol=1e-3), (out2, ref2)

    # 3) Multi-tile accumulation across the reduction axis (force small tiles).
    x3, y3 = _make_inputs(k3, (2, 4, 32, 32))
    out3 = jax.block_until_ready(custom_asymmetric_loss(x3, y3, max_row_tile=8))
    ref3 = _reference_jax(x3, y3)
    assert jnp.allclose(out3, ref3, rtol=1e-4, atol=1e-3), (out3, ref3)

    print("KERNEL_OK")
</pallas_src>

<mosaic_0001>
module attributes {stable_mosaic.version = 11 : i64} {
  func.func @_asl_kernel(%arg0: i32, %arg1: i32, %arg2: memref<8x128xf32, #tpu.memory_space<vmem>>, %arg3: memref<8x128xf32, #tpu.memory_space<vmem>>, %arg4: memref<8x128xf32, #tpu.memory_space<vmem>>) attributes {dimension_semantics = [#tpu.dimension_semantics<parallel>, #tpu.dimension_semantics<arbitrary>], iteration_bounds = array<i64: 2, 1>, scalar_prefetch = 0 : i64, scratch_operands = 0 : i64, tpu.core_type = #tpu.core_type<tc>, window_params = [{transform_indices = @transform_0, window_bounds = array<i64: 8, 128>}, {transform_indices = @transform_1, window_bounds = array<i64: 8, 128>}, {transform_indices = @transform_2, window_bounds = array<i64: 8, 128>}]} {
    %c0_i32 = arith.constant 0 : i32
    %0 = arith.cmpi eq, %arg1, %c0_i32 : i32
    %1 = arith.extui %0 : i1 to i32
    %c0_i32_0 = arith.constant 0 : i32
    %2 = arith.cmpi ne, %1, %c0_i32_0 : i32
    scf.if %2 {
      %cst_18 = arith.constant 0.000000e+00 : f32
      %39 = vector.broadcast %cst_18 : f32 to vector<8x128xf32>
      %c0_19 = arith.constant 0 : index
      %c0_20 = arith.constant 0 : index
      %40 = vector.load %arg4[%c0_19, %c0_20] : memref<8x128xf32, #tpu.memory_space<vmem>>, vector<8x128xf32>
      tpu.vector_store %arg4[%c0_19, %c0_20], %39 {strides = array<i32>} : memref<8x128xf32, #tpu.memory_space<vmem>>, vector<8x128xf32>,
    } else {
    }
    %c0 = arith.constant 0 : index
    %c0_1 = arith.constant 0 : index
    %3 = vector.load %arg2[%c0, %c0_1] : memref<8x128xf32, #tpu.memory_space<vmem>>, vector<8x128xf32>
    %c0_2 = arith.constant 0 : index
    %c0_3 = arith.constant 0 : index
    %4 = vector.load %arg3[%c0_2, %c0_3] : memref<8x128xf32, #tpu.memory_space<vmem>>, vector<8x128xf32>
    %cst = arith.constant -5.000000e-01 : f32
    %5 = vector.broadcast %cst : f32 to vector<8x128xf32>
    %6 = arith.cmpf ogt, %4, %5 : vector<8x128xf32>
    %cst_4 = arith.constant 0.000000e+00 : f32
    %7 = vector.broadcast %cst_4 : f32 to vector<8x128xf32>
    %8 = arith.select %6, %3, %7 : vector<8x128xi1>, vector<8x128xf32>
    %cst_5 = arith.constant 0.000000e+00 : f32
    %9 = vector.broadcast %cst_5 : f32 to vector<8x128xf32>
    %10 = arith.select %6, %4, %9 : vector<8x128xi1>, vector<8x128xf32>
    %11 = arith.negf %8 : vector<8x128xf32>
    %12 = math.exp %11 : vector<8x128xf32>
    %cst_6 = arith.constant 1.000000e+00 : f32
    %13 = vector.broadcast %cst_6 : f32 to vector<8x128xf32>
    %14 = arith.addf %13, %12 : vector<8x128xf32>
    %15 = arith.divf %13, %14 : vector<8x128xf32>
    %cst_7 = arith.constant 1.000000e+00 : f32
    %16 = vector.broadcast %cst_7 : f32 to vector<8x128xf32>
    %17 = arith.subf %16, %15 : vector<8x128xf32>
    %cst_8 = arith.constant 5.000000e-02 : f32
    %18 = vector.broadcast %cst_8 : f32 to vector<8x128xf32>
    %19 = arith.addf %17, %18 : vector<8x128xf32>
    %cst_9 = arith.constant 1.000000e+00 : f32
    %20 = vector.broadcast %cst_9 : f32 to vector<8x128xf32>
    %21 = arith.minimumf %19, %20 : vector<8x128xf32>
    %cst_10 = arith.constant 5.000000e-01 : f32
    %22 = vector.broadcast %cst_10 : f32 to vector<8x128xf32>
    %23 = arith.cmpf ogt, %10, %22 : vector<8x128xf32>
    %24 = arith.select %23, %15, %21 : vector<8x128xi1>, vector<8x128xf32>
    %cst_11 = arith.constant 9.99999993E-9 : f32
    %25 = vector.broadcast %cst_11 : f32 to vector<8x128xf32>
    %26 = arith.maximumf %24, %25 : vector<8x128xf32>
    %27 = math.log %26 : vector<8x128xf32>
    %cst_12 = arith.constant 1.000000e+00 : f32
    %28 = vector.broadcast %cst_12 : f32 to vector<8x128xf32>
    %29 = arith.subf %28, %24 : vector<8x128xf32>
    %30 = arith.mulf %29, %29 : vector<8x128xf32>
    %31 = arith.mulf %30, %30 : vector<8x128xf32>
    %32 = arith.select %23, %29, %31 : vector<8x128xi1>, vector<8x128xf32>
    %33 = arith.mulf %27, %32 : vector<8x128xf32>
    %c0_13 = arith.constant 0 : index
    %c0_14 = arith.constant 0 : index
    %34 = vector.load %arg4[%c0_13, %c0_14] : memref<8x128xf32, #tpu.memory_space<vmem>>, vector<8x128xf32>
    %cst_15 = arith.constant 0.000000e+00 : f32
    %35 = vector.broadcast %cst_15 : f32 to vector<8x128xf32>
    %36 = arith.select %6, %33, %35 : vector<8x128xi1>, vector<8x128xf32>
    %37 = arith.addf %34, %36 : vector<8x128xf32>
    %c0_16 = arith.constant 0 : index
    %c0_17 = arith.constant 0 : index
    %38 = vector.load %arg4[%c0_16, %c0_17] : memref<8x128xf32, #tpu.memory_space<vmem>>, vector<8x128xf32>
    tpu.vector_store %arg4[%c0_16, %c0_17], %37 {strides = array<i32>} : memref<8x128xf32, #tpu.memory_space<vmem>>, vector<8x128xf32>,
    return
  }
  func.func @transform_0(%arg0: i32, %arg1: i32) -> (i32, i32) {
    %c1_i32 = arith.constant 1 : i32
    %0 = arith.muli %arg0, %c1_i32 : i32
    %1 = arith.addi %0, %arg1 : i32
    %c0_i32 = arith.constant 0 : i32
    %c0_i32_0 = arith.constant 0 : i32
    return %1, %c0_i32 : i32, i32
  }
  func.func @transform_1(%arg0: i32, %arg1: i32) -> (i32, i32) {
    %c1_i32 = arith.constant 1 : i32
    %0 = arith.muli %arg0, %c1_i32 : i32
    %1 = arith.addi %0, %arg1 : i32
    %c0_i32 = arith.constant 0 : i32
    %c0_i32_0 = arith.constant 0 : i32
    return %1, %c0_i32 : i32, i32
  }
  func.func @transform_2(%arg0: i32, %arg1: i32) -> (i32, i32) {
    %c0_i32 = arith.constant 0 : i32
    %c0_i32_0 = arith.constant 0 : i32
    return %arg0, %c0_i32 : i32, i32
  }
}

</mosaic_0001>

<bundles_post_ra>
// kernel: tpu_custom_call.1
= control target key start
LH: loop header
LB: loop body
LE: loop exit
PB: predicated region body
PF: predicated region fallthrough
CT: control target
= control target key end

     0   :  { %7 = vsyncpa [#allocation3], 0  ;;  %s851_s0 = inlined_call_operand.hbm [shape: f32[16,128], index: 0, kind: input, shape index: {}]   ;;  %s852_s1 = inlined_call_operand.hbm [shape: f32[16,128], index: 1, kind: input, shape index: {}]   ;;  %s853_s2 = inlined_call_operand.hbm [shape: f32[16,128], index: 2, kind: output, shape index: {}]  }
   0x1   :  { %9 = vsyncpa [#allocation3 + $0x1], 0 }
   0x2   :  { %10 = vsyncpa [#allocation6], 0 }
   0x3   :  { %12 = vsyncpa [#allocation6 + $0x1], 0 }
   0x4   :  { %13 = vsyncpa [#allocation4], 0 }
   0x5   :  { %15 = vsyncpa [#allocation4 + $0x1], 0  ;;  %s623_s9 = smov 0   ;;  %s625_s10 = smov 0  }
   0x6   :  { %s627_s11 = smov 0   ;;  %s629_s12 = smov 0  }
   0x7   :  { %s631_s13 = smov 0   ;;  %s633_s14 = smov 0  }
   0x8 LB: > { %s366_s15 = sadd.s32 4294967295, %s603_s14   ;;  %s367_s16 = sadd.s32 4294967294, %s603_s14   ;;  %s603_s14 = sphi %s633_s14, %s21_s14   ;;  %s599_s13 = sphi %s631_s13, %s873_s13   ;;  %s595_s12 = sphi %s629_s12, %s872_s12   ;;  %s591_s11 = sphi %s627_s11, %s871_s11   ;;  %s587_s10 = sphi %s625_s10, %s870_s10   ;;  %s583_s9 = sphi %s623_s9, %s869_s9  }
   0x9   : > { %s33_s17 = sadd.s32 1, %s599_s13  ;;  %s42_s18 = sadd.s32 1, %s591_s11 }
   0xa   : > { %p35_p0 = scmp.ge.s32.totalorder %s33_s17, 2  ;;  %p49_p1 = scmp.ne.s32.totalorder %s591_s11, %s587_s10 }
   0xb   : > { %p50_p2 = scmp.eq.s32.totalorder %s603_s14, 0  ;;  %p55_p3 = scmp.ne.s32.totalorder %s587_s10, %s583_s9 }
   0xc   : > { %s875_s17 = smov (%p35_p0, %s33_s17), 0  ;;  %p56_p5 = scmp.eq.s32.totalorder %s366_s15, 0 }
   0xd   : > { %p664_p4 = por %p50_p2, %p49_p1  ;;  %s39_s20 = ssub.s32 %s599_s13, %s875_s17 }
   0xe   : > { %p107_p6 = scmp.eq.s32.totalorder %s366_s15, 1  ;;  %p40_p7 = scmp.eq.s32.totalorder %s39_s20, 0 }
   0xf   : > { %p670_p8 = por %p56_p5, %p55_p3  ;;  %p113_p10 = scmp.eq.s32.totalorder %s367_s16, 1 }
  0x10   : > { %p674_p9 = por %p107_p6, %p49_p1  ;;  %p400_p13 = scmp.lt.s32.totalorder %s603_s14, 2 }
  0x11   : > { %s857_s21 = scalar_select %p670_p8, 1, 0 }
  0x12   : > { %s858_s22 = scalar_select %p674_p9, 1, 0 }
  0x13   : > { %s679_s23 = scalar_select %p40_p7, %s591_s11, %s42_s18  }
  0x14   : > { %p681_p11 = por %p113_p10, %p55_p3  ;;  %s688_s25 = sand.u32 1, %s591_s11  }
  0x15   : > { %s370_s26 = sshll.u32 %s688_s25, 3  ;;  %s371_s27 = sshll.u32 %s599_s13, 7 }
  0x16   : > { %s859_s24 = scalar_select %p681_p11, 1, 0 }
  0x17   : > { %s697_s30 = scalar_lea.hbm %s851_s0, %s371_s27  ;;  %s137_s3 = scalar_lea.vmem [#allocation2], %s370_s26 }
  0x18   : > { %s145_s4 = sshll.u32 %s137_s3, 4  ;;  %p705_p0 = pnand %p400_p13, %p664_p4  ;;  %s701_s4 = int_to_ptr.vmem [resolvable:$true] %s145_s4 }
  0x19   : > { %s134_s6 = scalar_lea.sflag [#allocation3], %s688_s25  ;;  %s457_s7 = scalar_lea.hbm %s697_s30, 128 }
  0x1a   : > { %p458_p3 = scmp.ne.s32.totalorder %s697_s30, %s457_s7  ;;  %p459_p5 = pneg %p705_p0 }
  0x1b   : > { %s462_s16 = scalar_lea.hbm %s851_s0, 256  ;;  %p463_p4 = scmp.lt.u32.totalorder %s697_s30, %s851_s0 }
  0x1c   : > { %p460_p6 = pnand %p459_p5, %p458_p3  ;;  %p464_p10 = scmp.lt.u32.totalorder %s462_s16, %s457_s7 }
  0x1d   : > { %p466_p12 = scmp.lt.u32.totalorder %s457_s7, %s697_s30 }
  0x1e   : > { %p461_p7 = pneg %p460_p6  ;;  %p465_p13 = por %p464_p10, %p463_p4 }
  0x20   : > { %p467_p1 = por %p466_p12, %p465_p13 }
  0x22   : > { %p468_p2 = pnand %p467_p1, %p461_p7 }
  0x24   : > { %471 = shalt.err (!%p468_p2)
}
  0x25   : > { %s472_s20 = scalar_lea.vmem %s701_s4, 128  ;;  %s605_s28 = smov [#allocation2]  }
  0x26   : > { %p473_p3 = scmp.ne.s32.totalorder %s701_s4, %s472_s20  ;;  %s477_s29 = sshll.u32 %s605_s28, 4  ;;  %s478_s29 = int_to_ptr.vmem [resolvable:$false] %s477_s29 }
  0x27   : > { %s479_s3 = scalar_lea.vmem %s478_s29, 256  ;;  %p480_p9 = scmp.lt.s32.totalorder %s701_s4, %s478_s29 }
  0x28   : > { %p475_p6 = pnand %p473_p3, %p459_p5  ;;  %p481_p4 = scmp.lt.s32.totalorder %s479_s3, %s472_s20 }
  0x2a   : > { %p476_p11 = pneg %p475_p6  ;;  %p482_p10 = por %p481_p4, %p480_p9 }
  0x2c   : > { %p483_p12 = pnand %p482_p10, %p476_p11 }
  0x2e   : > { %486 = shalt.err (!%p483_p12)
}
  0x2f   : > { %392 = dma.hbm_to_vmem [thread:$0]  (!%p705_p0), %s697_s30, 128, %s701_s4, %s134_s6  }
  0x30   : > { %p861_p1 = scmp.lt.s32.totalorder %s603_s14, 3  ;;  %p862_p2 = scmp.ge.s32.totalorder %s603_s14, 1 }
  0x31   : > { %s750_s16 = scalar_lea.hbm %s852_s1, %s371_s27  ;;  %s156_s18 = scalar_lea.vmem [#allocation5], %s370_s26 }
  0x32   : > { %p741_p7 = pnand %p862_p2, %p861_p1  ;;  %s164_s19 = sshll.u32 %s156_s18, 4  ;;  %s165_s19 = int_to_ptr.vmem [resolvable:$true] %s164_s19 }
  0x33   : > { %s153_s30 = scalar_lea.sflag [#allocation6], %s688_s25  ;;  %s487_s4 = scalar_lea.hbm %s750_s16, 128 }
  0x34   : > { %s863_s7 = scalar_select %p741_p7, 1, 0 }
  0x35   : > { %p488_p9 = scmp.ne.s32.totalorder %s750_s16, %s487_s4  ;;  %s492_s27 = scalar_lea.hbm %s852_s1, 256 }
  0x36   : > { %p493_p3 = scmp.lt.u32.totalorder %s750_s16, %s852_s1  ;;  %p494_p6 = scmp.lt.u32.totalorder %s492_s27, %s487_s4 }
  0x37   : > { %p490_p11 = pnand %p488_p9, %p459_p5  ;;  %p496_p10 = scmp.lt.u32.totalorder %s487_s4, %s750_s16 }
  0x38   : > { %p495_p4 = por %p494_p6, %p493_p3 }
  0x39   : > { %p491_p13 = pneg %p490_p11 }
  0x3a   : > { %p497_p12 = por %p496_p10, %p495_p4 }
  0x3c   : > { %p498_p1 = pnand %p497_p12, %p491_p13 }
  0x3e   : > { %501 = shalt.err (!%p498_p1)
}
  0x3f   : > { %s502_s25 = scalar_lea.vmem %s165_s19, 128  ;;  %s606_s26 = smov [#allocation5]  }
  0x40   : > { %p503_p2 = scmp.ne.s32.totalorder %s165_s19, %s502_s25  ;;  %s507_s3 = sshll.u32 %s606_s26, 4  ;;  %s508_s3 = int_to_ptr.vmem [resolvable:$false] %s507_s3 }
  0x41   : > { %s509_s8 = scalar_lea.vmem %s508_s3, 256  ;;  %p510_p8 = scmp.lt.s32.totalorder %s165_s19, %s508_s3 }
  0x42   : > { %p505_p9 = pnand %p503_p2, %p459_p5  ;;  %p511_p7 = scmp.lt.s32.totalorder %s509_s8, %s502_s25 }
  0x44   : > { %p506_p11 = pneg %p505_p9  ;;  %p512_p3 = por %p511_p7, %p510_p8 }
  0x46   : > { %p513_p6 = pnand %p512_p3, %p506_p11 }
  0x48   : > { %516 = shalt.err (!%p513_p6)
}
  0x49   : > { %395 = dma.hbm_to_vmem [thread:$0]  (!%p705_p0), %s750_s16, 128, %s165_s19, %s153_s30  }
  0x4a   : > { %p864_p13 = scmp.ne.s32.totalorder %s863_s7, 0 }
  0x4b   : > { %s777_s15 = sand.u32 (!%p864_p13), 1, %s587_s10   ;;  %p865_p8 = scmp.ne.s32.totalorder (!%p864_p13), %s857_s21, 0 }
  0x4c   : > { %173 = sbr.rel (%p864_p13) target bundleno = 154 (0x9a), region = 28  ;;  %s780_s18 = sshll.u32 (!%p864_p13), %s777_s15, 3 }
  0x4d   : > { %s176_s4 = scalar_lea.sflag (!%p864_p13), [#allocation3], %s777_s15  ;;  %s179_s6 = scalar_lea.vmem (!%p864_p13), [#allocation2], %s780_s18 }
  0x53   : > { %570 = dma.done.wait (%p865_p8), %s176_s4, 128  }
  0x54   : > { %572 = vsyncadd (%p865_p8), %s176_s4, 4294967168  ;;  %s185_s5 = scalar_lea.sflag [#allocation6], %s777_s15  ;;  %s188_s7 = scalar_lea.vmem [#allocation5], %s780_s18 }
  0x55   : > { %574 = dma.done.wait (%p865_p8), %s185_s5, 128  }
  0x56   : > { %576 = vsyncadd (%p865_p8), %s185_s5, 4294967168  ;;  %v221_v0 = vld [vmem:[%s179_s6] sm:$0xff]  ;;  %v222_v1 = vld [vmem:[%s188_s7] sm:$0xff]  ;;  %s380_s21 = sshll.u32 %s595_s12, 7  ;;  %s213_s16 = scalar_lea.vmem [#allocation7], %s780_s18 }
  0x57   : > { %vm223_vm0 = vcmp.gt.f32.partialorder %v222_v1, -0.5  ;;  %s263_s19 = sshll.u32 %s213_s16, 4  ;;  %s802_s27 = scalar_lea.hbm %s853_s2, %s380_s21  ;;  %s804_s19 = int_to_ptr.vmem [resolvable:$true] %s263_s19 }
  0x58   : > { %v224_v2 = vsel %vm223_vm0, %v221_v0, 0.0  ;;  %v225_v7 = vsel %vm223_vm0, %v222_v1, 0.0  ;;  %s250_s28 = scalar_lea.sflag [#allocation4], %s777_s15  ;;  %s517_s29 = scalar_lea.vmem %s804_s19, 128 }
  0x59   : > { %v378_v3 = vmul.f32 -1.442695, %v224_v2  ;;  %vm235_vm1 = vcmp.gt.f32.partialorder %v225_v7, 0.5  ;;  %p518_p0 = scmp.ne.s32.totalorder %s804_s19, %s517_s29  ;;  %p866_p5 = scmp.ne.s32.totalorder %s858_s22, 0 }
  0x5a   : > { %s607_s12 = smov [#allocation7]  }
  0x5b   : > { %451 = vpow2.f32 %v378_v3  ;;  %p519_p7 = pnand %p518_p0, %p866_p5  ;;  %s521_s25 = sshll.u32 %s607_s12, 4  ;;  %s522_s25 = int_to_ptr.vmem [resolvable:$false] %s521_s25 }
  0x5c   : > { %s523_s26 = scalar_lea.vmem %s522_s25, 256  ;;  %p524_p10 = scmp.lt.s32.totalorder %s804_s19, %s522_s25 }
  0x5d   : > { %p520_p4 = pneg %p519_p7  ;;  %p525_p12 = scmp.lt.s32.totalorder %s523_s26, %s517_s29 }
  0x5f   : > { %p526_p1 = por %p525_p12, %p524_p10 }
  0x61   : > { %p527_p2 = pnand %p526_p1, %p520_p4 }
  0x65   : > { %v452_v4 = vpop.eup %451 }
  0x66   : > { %v229_v5 = vadd.f32 1.0, %v452_v4 }
  0x68   : > { %453 = vrcp.f32 %v229_v5 }
  0x72   : > { %v454_v6 = vpop.eup %453 }
  0x73   : > { %v232_v8 = vsub.f32 1.0, %v454_v6 }
  0x75   : > { %v233_v9 = vadd.f32 0.05, %v232_v8 }
  0x77   : > { %v234_v10 = vmin.f32 %v233_v9, 1.0 }
  0x79   : > { %v236_v11 = vsel %vm235_vm1, %v454_v6, %v234_v10 }
  0x7a   : > { %v237_v12 = vmax.f32 %v236_v11, 1e-08  ;;  %v240_v13 = vsub.f32 1.0, %v236_v11 }
  0x7c   : > { %455 = vlog2.f32 %v237_v12  ;;  %v241_v14 = vmul.f32 %v240_v13, %v240_v13 }
  0x7e   : > { %v242_v15 = vmul.f32 %v241_v14, %v241_v14 }
  0x80   : > { %v243_v17 = vsel %vm235_vm1, %v240_v13, %v242_v15 }
  0x86   : > { %v456_v16 = vpop.eup %455 }
  0x87   : > { %v239_v18 = vmul.f32 0.6931472, %v456_v16 }
  0x89   : > { %v244_v19 = vmul.f32 %v243_v17, %v239_v18 }
  0x8b   : > { %v246_v20 = vsel %vm223_vm0, %v244_v19, 0.0 }
  0x8c   : > { %248 = vst [vmem:[%s213_s16] sm:$0xff] %v246_v20 }
  0x8d   : > { %530 = shalt.err (!%p527_p2)
}
  0x8e   : > { %s531_s3 = scalar_lea.hbm %s802_s27, 128  ;;  %s535_s18 = scalar_lea.hbm %s853_s2, 256 }
  0x8f   : > { %p532_p9 = scmp.ne.s32.totalorder %s802_s27, %s531_s3  ;;  %p536_p6 = scmp.lt.u32.totalorder %s802_s27, %s853_s2 }
  0x90   : > { %p537_p13 = scmp.lt.u32.totalorder %s535_s18, %s531_s3  ;;  %p539_p0 = scmp.lt.u32.totalorder %s531_s3, %s802_s27 }
  0x91   : > { %p533_p11 = pnand %p532_p9, %p866_p5 }
  0x92   : > { %p538_p8 = por %p537_p13, %p536_p6 }
  0x93   : > { %p534_p3 = pneg %p533_p11 }
  0x94   : > { %p540_p7 = por %p539_p0, %p538_p8 }
  0x96   : > { %p541_p4 = pnand %p540_p7, %p534_p3 }
  0x98   : > { %544 = shalt.err (!%p541_p4)
}
  0x99   : > { %387 = dma.vmem_to_hbm [thread:$0]  (%p866_p5), %s804_s19, 128, %s802_s27, %s250_s28  }
  0x9a PF: > { %s275_s5 = sand.u32 1, %s583_s9   ;;  %p867_p10 = scmp.ne.s32.totalorder %s859_s24, 0 }
  0x9b   : > { %p868_p12 = scmp.ge.s32.totalorder %s603_s14, 2  ;;  %s276_s7 = scalar_lea.sflag [#allocation4], %s275_s5 }
  0x9d   : > { %p397_p1 = pnand %p868_p12, %p867_p10 }
  0x9f   : > { %578 = dma.done.wait (!%p397_p1), %s276_s7, 128  }
  0xa0   : > { %580 = vsyncadd (!%p397_p1), %s276_s7, 4294967168  ;;  %s21_s14 = sadd.s32 1, %s603_s14   ;;  %s869_s9 = smov %s587_s10 }
  0xa1   : > { %p18_p2 = scmp.ge.s32.totalorder %s21_s14, 4   ;;  %s870_s10 = smov %s591_s11 }
  0xa2   : > { %s871_s11 = smov %s679_s23  ;;  %s872_s12 = smov %s599_s13 }
  0xa3   : > { %s873_s13 = smov %s875_s17  ;;  %20 = sbr.rel (!%p18_p2) target bundleno = 8 (0x8), region = 90 }
  0xaa   :  { %281 = vsyncpa [#allocation3], 1 }
  0xab   :  { %283 = vsyncpa [#allocation3 + $0x1], 1 }
  0xac   :  { %284 = vsyncpa [#allocation6], 1 }
  0xad   :  { %286 = vsyncpa [#allocation6 + $0x1], 1 }
  0xae   :  { %287 = vsyncpa [#allocation4], 1 }
  0xaf   :  { %289 = vsyncpa [#allocation4 + $0x1], 1 }

</bundles_post_ra>
